<compile_context>
chip_gen: v7x
topology: tpu7x:2x2x1
jax: 0.10.0
libtpu: 0.0.40
codegen_flags: <defaults>
</compile_context>

<pallas_src>
import functools

import numpy as np
import jax
import jax.numpy as jnp
from jax.experimental import pallas as pl
from jax.experimental.pallas import tpu as pltpu

BN_EPS = 1e-5
HIGHEST = jax.lax.Precision.HIGHEST


# ----------------------------------------------------------------------------
# Kernels.  Channel-major blocks: (1, C, hw_tile) with HW on lanes.
# ----------------------------------------------------------------------------
def _conv1x1_stats_kernel(x_ref, w_ref, y_ref, s_ref, ss_ref,
                          *, compute_dtype, precision):
    # x_ref: (1, Cin, THW); w_ref: (Cout, Cin); y_ref: (1, Cout, THW)
    a = x_ref[0].astype(compute_dtype)
    y = jnp.dot(w_ref[...], a, preferred_element_type=jnp.float32,
                precision=precision)                        # (Cout, THW) f32
    y_ref[0] = y.astype(y_ref.dtype)
    s_ref[0, 0] = jnp.sum(y, axis=-1, keepdims=True)        # (Cout, 1)
    ss_ref[0, 0] = jnp.sum(y * y, axis=-1, keepdims=True)


def _bnrelu_conv1x1_stats_kernel(x_ref, w_ref, sc_ref, of_ref,
                                 y_ref, s_ref, ss_ref,
                                 *, compute_dtype, precision):
    # Folded BN (per-channel scale/offset) + ReLU, then 1x1 conv as a matmul.
    a = jnp.maximum(x_ref[0].astype(jnp.float32) * sc_ref[...] + of_ref[...],
                    0.0)                                    # (Cin, THW) f32
    y = jnp.dot(w_ref[...], a.astype(compute_dtype),
                preferred_element_type=jnp.float32, precision=precision)
    y_ref[0] = y.astype(y_ref.dtype)
    s_ref[0, 0] = jnp.sum(y, axis=-1, keepdims=True)
    ss_ref[0, 0] = jnp.sum(y * y, axis=-1, keepdims=True)


def _bnrelu_conv3x3_stats_kernel(x_ref, w_ref, sc_ref, of_ref,
                                 y_ref, s_ref, ss_ref,
                                 *, H, W, compute_dtype, precision):
    # x_ref: (1, C1, H*W) conv1 output for one image (channel-major).
    # w_ref: (9, C1out, C1in) -- one (Cout, Cin) matrix per 3x3 tap.
    C1 = x_ref.shape[1]
    HW = H * W

    # bn1 (pre-folded scale/offset) + ReLU in f32.
    a = jnp.maximum(x_ref[0].astype(jnp.float32) * sc_ref[...] + of_ref[...],
                    0.0)                                    # (C1, HW)

    # Flattened pixel row/col indices for the edge masks (compile-time consts).
    pos = jax.lax.broadcasted_iota(jnp.int32, (1, HW), 1)
    row = pos // W
    col = pos - row * W

    # 9 accumulating MXU dots; each tap is an XLU roll of the flattened image
    # plus an edge mask (implements the zero padding).  No halo scratch, no
    # im2col concat, no per-step full-scratch zeroing.
    acc = jnp.zeros((C1, HW), jnp.float32)
    for k, (dy, dx) in enumerate((ky - 1, kx - 1)
                                 for ky in range(3) for kx in range(3)):
        s = dy * W + dx
        shifted = a if s == 0 else pltpu.roll(a, shift=(-s) % HW, axis=1)
        mask = ((row + dy >= 0) & (row + dy < H) &
                (col + dx >= 0) & (col + dx < W))
        tap = jnp.where(mask, shifted, 0.0).astype(compute_dtype)
        acc = acc + jnp.dot(w_ref[k], tap,
                            preferred_element_type=jnp.float32,
                            precision=precision)
    y_ref[0] = acc.astype(y_ref.dtype)
    s_ref[0, 0] = jnp.sum(acc, axis=-1, keepdims=True)
    ss_ref[0, 0] = jnp.sum(acc * acc, axis=-1, keepdims=True)


def _bn_add_relu_kernel(y_ref, res_ref, sc_ref, of_ref, o_ref):
    # bn3 (folded) + identity residual + ReLU.
    o_ref[0] = jnp.maximum(
        y_ref[0].astype(jnp.float32) * sc_ref[...] + of_ref[...]
        + res_ref[0].astype(jnp.float32), 0.0)


# ----------------------------------------------------------------------------
# Host-side glue: global BN statistics folded into per-channel scale/offset.
# ----------------------------------------------------------------------------
def _fold_bn(part_sum, part_sumsq, gamma, beta, count):
    # Biased batch variance over all (N,H,W) pixels (PyTorch training mode).
    # Single-pass E[x^2]-E[x]^2 in f32 (conv outputs here are near zero-mean).
    total = jnp.sum(part_sum, axis=(0, 1, 3))       # (C,)
    total_sq = jnp.sum(part_sumsq, axis=(0, 1, 3))  # (C,)
    mean = total / count
    var = total_sq / count - mean * mean
    scale = gamma * jax.lax.rsqrt(var + BN_EPS)
    offset = beta - mean * scale
    return (scale.reshape(-1, 1).astype(jnp.float32),
            offset.reshape(-1, 1).astype(jnp.float32))


def _pick_hw_tile(HW, target=4096):
    """Largest multiple of 128 that divides HW and is <= target (else HW)."""
    if HW <= target or HW % 128 != 0:
        return HW
    t = (target // 128) * 128
    while t >= 128:
        if HW % t == 0:
            return t
        t -= 128
    return HW


def bottleneck_forward(x_nchw, params, *, compute_dtype=jnp.bfloat16,
                       hw_tile=None):
    """x_nchw: (N, Cin, H, W) float32 (PyTorch layout).  Returns f32 NCHW."""
    (w1_oihw, w2_oihw, w3_oihw, g1, b1, g2, b2, g3, b3) = params
    N, Cin, H, W = x_nchw.shape
    C1 = w1_oihw.shape[0]
    C4 = w3_oihw.shape[0]
    HW = H * W
    assert Cin == C4, "identity residual (downsample=None) needs inplanes == planes*4"

    exact = np.dtype(compute_dtype) == np.dtype(np.float32)
    precision = HIGHEST if exact else None
    store_dtype = jnp.float32 if exact else jnp.bfloat16   # inter-pass activations
    f32 = jnp.float32

    if hw_tile is None:
        hw_tile = _pick_hw_tile(HW)
    assert HW % hw_tile == 0 and (hw_tile % 128 == 0 or hw_tile == HW)
    T = HW // hw_tile

    # NCHW flattened is already channel-major (C rows, H*W lanes): no transpose.
    x_cm = x_nchw.reshape(N, Cin, HW)

    # Conv weights -> (Cout, Cin) matmul layout; cast once to the MXU dtype.
    w1 = w1_oihw[:, :, 0, 0].astype(compute_dtype)                  # (C1, Cin)
    w3 = w3_oihw[:, :, 0, 0].astype(compute_dtype)                  # (C4, C1)
    w2t = jnp.transpose(w2_oihw, (2, 3, 0, 1)).reshape(9, C1, C1)   # tap-major
    w2t = w2t.astype(compute_dtype)

    par2 = pltpu.CompilerParams(dimension_semantics=("parallel", "parallel"))
    par1 = pltpu.CompilerParams(dimension_semantics=("parallel",))

    def act_out(c, t):
        return (jax.ShapeDtypeStruct((N, c, HW), store_dtype),
                jax.ShapeDtypeStruct((N, t, c, 1), f32),
                jax.ShapeDtypeStruct((N, t, c, 1), f32))

    # ---- pass 1: conv1 (1x1) + partial BN1 stats (grid = N x HW-tiles) -----
    y1, s1, ss1 = pl.pallas_call(
        functools.partial(_conv1x1_stats_kernel,
                          compute_dtype=compute_dtype, precision=precision),
        grid=(N, T),
        in_specs=[pl.BlockSpec((1, Cin, hw_tile), lambda n, t: (n, 0, t)),
                  pl.BlockSpec((C1, Cin), lambda n, t: (0, 0))],
        out_specs=(pl.BlockSpec((1, C1, hw_tile), lambda n, t: (n, 0, t)),
                   pl.BlockSpec((1, 1, C1, 1), lambda n, t: (n, t, 0, 0)),
                   pl.BlockSpec((1, 1, C1, 1), lambda n, t: (n, t, 0, 0))),
        out_shape=act_out(C1, T),
        compiler_params=par2,
    )(x_cm, w1)
    scale1, offset1 = _fold_bn(s1, ss1, g1, b1, N * HW)

    # ---- pass 2: bn1+relu -> conv2 (3x3 via roll+mask taps) + BN2 stats ----
    y2, s2, ss2 = pl.pallas_call(
        functools.partial(_bnrelu_conv3x3_stats_kernel, H=H, W=W,
                          compute_dtype=compute_dtype, precision=precision),
        grid=(N,),
        in_specs=[pl.BlockSpec((1, C1, HW), lambda n: (n, 0, 0)),
                  pl.BlockSpec((9, C1, C1), lambda n: (0, 0, 0)),
                  pl.BlockSpec((C1, 1), lambda n: (0, 0)),
                  pl.BlockSpec((C1, 1), lambda n: (0, 0))],
        out_specs=(pl.BlockSpec((1, C1, HW), lambda n: (n, 0, 0)),
                   pl.BlockSpec((1, 1, C1, 1), lambda n: (n, 0, 0, 0)),
                   pl.BlockSpec((1, 1, C1, 1), lambda n: (n, 0, 0, 0))),
        out_shape=act_out(C1, 1),
        compiler_params=par1,
    )(y1, w2t, scale1, offset1)
    scale2, offset2 = _fold_bn(s2, ss2, g2, b2, N * HW)

    # ---- pass 3: bn2+relu -> conv3 (1x1) + partial BN3 stats ---------------
    y3, s3, ss3 = pl.pallas_call(
        functools.partial(_bnrelu_conv1x1_stats_kernel,
                          compute_dtype=compute_dtype, precision=precision),
        grid=(N, T),
        in_specs=[pl.BlockSpec((1, C1, hw_tile), lambda n, t: (n, 0, t)),
                  pl.BlockSpec((C4, C1), lambda n, t: (0, 0)),
                  pl.BlockSpec((C1, 1), lambda n, t: (0, 0)),
                  pl.BlockSpec((C1, 1), lambda n, t: (0, 0))],
        out_specs=(pl.BlockSpec((1, C4, hw_tile), lambda n, t: (n, 0, t)),
                   pl.BlockSpec((1, 1, C4, 1), lambda n, t: (n, t, 0, 0)),
                   pl.BlockSpec((1, 1, C4, 1), lambda n, t: (n, t, 0, 0))),
        out_shape=act_out(C4, T),
        compiler_params=par2,
    )(y2, w3, scale2, offset2)
    scale3, offset3 = _fold_bn(s3, ss3, g3, b3, N * HW)

    # ---- pass 4: bn3 + identity residual + relu -----------------------------
    out_cm = pl.pallas_call(
        _bn_add_relu_kernel,
        grid=(N, T),
        in_specs=[pl.BlockSpec((1, C4, hw_tile), lambda n, t: (n, 0, t)),
                  pl.BlockSpec((1, Cin, hw_tile), lambda n, t: (n, 0, t)),
                  pl.BlockSpec((C4, 1), lambda n, t: (0, 0)),
                  pl.BlockSpec((C4, 1), lambda n, t: (0, 0))],
        out_specs=pl.BlockSpec((1, C4, hw_tile), lambda n, t: (n, 0, t)),
        out_shape=jax.ShapeDtypeStruct((N, C4, HW), f32),
        compiler_params=par2,
    )(y3, x_cm, scale3, offset3)

    return out_cm.reshape(N, C4, H, W)   # already NCHW: no transpose needed


# ---------------------------- pure-JAX reference -----------------------------
def reference_forward(x_nchw, params):
    (w1, w2, w3, g1, b1, g2, b2, g3, b3) = params
    x = jnp.transpose(x_nchw, (0, 2, 3, 1))

    def conv(inp, w_oihw, pad):
        w = jnp.transpose(w_oihw, (2, 3, 1, 0))             # OIHW -> HWIO
        return jax.lax.conv_general_dilated(
            inp, w, window_strides=(1, 1),
            padding=[(pad, pad), (pad, pad)],
            dimension_numbers=("NHWC", "HWIO", "NHWC"),
            precision=HIGHEST)

    def bn(inp, g, b):
        m = inp.mean(axis=(0, 1, 2), keepdims=True)
        v = ((inp - m) ** 2).mean(axis=(0, 1, 2), keepdims=True)
        return (inp - m) * jax.lax.rsqrt(v + BN_EPS) * g.reshape(1, 1, 1, -1) \
            + b.reshape(1, 1, 1, -1)

    out = jax.nn.relu(bn(conv(x, w1, 0), g1, b1))
    out = jax.nn.relu(bn(conv(out, w2, 1), g2, b2))
    out = bn(conv(out, w3, 0), g3, b3)
    out = jax.nn.relu(out + x)
    return jnp.transpose(out, (0, 3, 1, 2))


if __name__ == "__main__":
    key = jax.random.PRNGKey(0)
    N, H, W = 2, 16, 16
    planes = 4
    inplanes = planes * 4      # identity residual valid (downsample=None)
    C4 = planes * 4

    ks = jax.random.split(key, 10)
    x = jax.random.normal(ks[0], (N, inplanes, H, W), jnp.float32)
    # conv weights in PyTorch OIHW layout
    w1 = 0.2 * jax.random.normal(ks[1], (planes, inplanes, 1, 1), jnp.float32)
    w2 = 0.2 * jax.random.normal(ks[2], (planes, planes, 3, 3), jnp.float32)
    w3 = 0.2 * jax.random.normal(ks[3], (C4, planes, 1, 1), jnp.float32)
    # BatchNorm affine params
    g1 = 1.0 + 0.1 * jax.random.normal(ks[4], (planes,), jnp.float32)
    b1 = 0.1 * jax.random.normal(ks[5], (planes,), jnp.float32)
    g2 = 1.0 + 0.1 * jax.random.normal(ks[6], (planes,), jnp.float32)
    b2 = 0.1 * jax.random.normal(ks[7], (planes,), jnp.float32)
    g3 = 1.0 + 0.1 * jax.random.normal(ks[8], (C4,), jnp.float32)
    b3 = 0.1 * jax.random.normal(ks[9], (C4,), jnp.float32)
    params = (w1, w2, w3, g1, b1, g2, b2, g3, b3)

    ref = reference_forward(x, params)

    # Exact path: f32 storage/operands + HIGHEST MXU precision, single HW tile.
    out_f32 = jax.block_until_ready(
        bottleneck_forward(x, params, compute_dtype=jnp.float32))
    assert out_f32.shape == (N, C4, H, W)
    np.testing.assert_allclose(np.asarray(out_f32), np.asarray(ref),
                               rtol=1e-3, atol=1e-3)

    # Exact path again with an explicit 128-lane HW tile (T=2) to exercise the
    # (N, T) grid used at large stage sizes.
    out_f32_tiled = jax.block_until_ready(
        bottleneck_forward(x, params, compute_dtype=jnp.float32, hw_tile=128))
    np.testing.assert_allclose(np.asarray(out_f32_tiled), np.asarray(ref),
                               rtol=1e-3, atol=1e-3)

    # Fast path: bf16 MXU operands + bf16 inter-pass activations, f32 accum.
    out_bf16 = jax.block_until_ready(
        bottleneck_forward(x, params, compute_dtype=jnp.bfloat16))
    np.testing.assert_allclose(np.asarray(out_bf16), np.asarray(ref),
                               rtol=5e-2, atol=5e-2)

    print("KERNEL_OK")
</pallas_src>

<mosaic_0001>
module attributes {stable_mosaic.version = 11 : i64} {
  func.func @_conv1x1_stats_kernel(%arg0: i32, %arg1: i32, %arg2: memref<1x16x256xf32, #tpu.memory_space<vmem>>, %arg3: memref<4x16xf32, #tpu.memory_space<vmem>>, %arg4: memref<1x4x256xf32, #tpu.memory_space<vmem>>, %arg5: memref<1x1x4x1xf32, #tpu.memory_space<vmem>>, %arg6: memref<1x1x4x1xf32, #tpu.memory_space<vmem>>) attributes {dimension_semantics = [#tpu.dimension_semantics<parallel>, #tpu.dimension_semantics<parallel>], iteration_bounds = array<i64: 2, 1>, scalar_prefetch = 0 : i64, scratch_operands = 0 : i64, tpu.core_type = #tpu.core_type<tc>, window_params = [{transform_indices = @transform_0, window_bounds = array<i64: 1, 16, 256>}, {pipeline_mode = #tpu.pipeline_mode<synchronous>, transform_indices = @transform_1, window_bounds = array<i64: 4, 16>}, {transform_indices = @transform_2, window_bounds = array<i64: 1, 4, 256>}, {transform_indices = @transform_3, window_bounds = array<i64: 1, 1, 4, 1>}, {transform_indices = @transform_4, window_bounds = array<i64: 1, 1, 4, 1>}]} {
    %c0 = arith.constant 0 : index
    %c0_0 = arith.constant 0 : index
    %c0_1 = arith.constant 0 : index
    %0 = vector.load %arg2[%c0, %c0_0, %c0_1] : memref<1x16x256xf32, #tpu.memory_space<vmem>>, vector<1x16x256xf32>
    %1 = vector.shape_cast %0 : vector<1x16x256xf32> to vector<16x256xf32>
    %c0_2 = arith.constant 0 : index
    %c0_3 = arith.constant 0 : index
    %2 = vector.load %arg3[%c0_2, %c0_3] : memref<4x16xf32, #tpu.memory_space<vmem>>, vector<4x16xf32>
    %cst = arith.constant dense<0.000000e+00> : vector<4x256xf32>
    %3 = tpu.matmul %2, %1, %cst {dimension_numbers = #tpu.dot_dimension_numbers<[1], [0], [0], [1], [0, 0, 1, 1], [], []>, precision = #tpu.contract_precision<fp32>} : vector<4x16xf32>, vector<16x256xf32>, vector<4x256xf32> -> vector<4x256xf32>
    %c0_4 = arith.constant 0 : index
    %c0_5 = arith.constant 0 : index
    %c0_6 = arith.constant 0 : index
    %4 = vector.load %arg4[%c0_4, %c0_5, %c0_6] : memref<1x4x256xf32, #tpu.memory_space<vmem>>, vector<1x4x256xf32>
    %5 = vector.shape_cast %4 : vector<1x4x256xf32> to vector<4x256xf32>
    %6 = vector.shape_cast %3 : vector<4x256xf32> to vector<1x4x256xf32>
    tpu.vector_store %arg4[%c0_4, %c0_5, %c0_6], %6 {strides = array<i32>} : memref<1x4x256xf32, #tpu.memory_space<vmem>>, vector<1x4x256xf32>,
    %cst_7 = arith.constant dense<0.000000e+00> : vector<4xf32>
    %7 = vector.multi_reduction <add>, %3, %cst_7 [1] : vector<4x256xf32> to vector<4xf32>
    %8 = vector.shape_cast %7 : vector<4xf32> to vector<4x1xf32>
    %c0_8 = arith.constant 0 : index
    %c0_9 = arith.constant 0 : index
    %c0_10 = arith.constant 0 : index
    %c0_11 = arith.constant 0 : index
    %9 = vector.load %arg5[%c0_8, %c0_9, %c0_10, %c0_11] : memref<1x1x4x1xf32, #tpu.memory_space<vmem>>, vector<1x1x4x1xf32>
    %10 = vector.shape_cast %9 : vector<1x1x4x1xf32> to vector<4x1xf32>
    %11 = vector.shape_cast %8 : vector<4x1xf32> to vector<1x1x4x1xf32>
    tpu.vector_store %arg5[%c0_8, %c0_9, %c0_10, %c0_11], %11 {strides = array<i32>} : memref<1x1x4x1xf32, #tpu.memory_space<vmem>>, vector<1x1x4x1xf32>,
    %12 = arith.mulf %3, %3 : vector<4x256xf32>
    %cst_12 = arith.constant dense<0.000000e+00> : vector<4xf32>
    %13 = vector.multi_reduction <add>, %12, %cst_12 [1] : vector<4x256xf32> to vector<4xf32>
    %14 = vector.shape_cast %13 : vector<4xf32> to vector<4x1xf32>
    %c0_13 = arith.constant 0 : index
    %c0_14 = arith.constant 0 : index
    %c0_15 = arith.constant 0 : index
    %c0_16 = arith.constant 0 : index
    %15 = vector.load %arg6[%c0_13, %c0_14, %c0_15, %c0_16] : memref<1x1x4x1xf32, #tpu.memory_space<vmem>>, vector<1x1x4x1xf32>
    %16 = vector.shape_cast %15 : vector<1x1x4x1xf32> to vector<4x1xf32>
    %17 = vector.shape_cast %14 : vector<4x1xf32> to vector<1x1x4x1xf32>
    tpu.vector_store %arg6[%c0_13, %c0_14, %c0_15, %c0_16], %17 {strides = array<i32>} : memref<1x1x4x1xf32, #tpu.memory_space<vmem>>, vector<1x1x4x1xf32>,
    return
  }
  func.func @transform_0(%arg0: i32, %arg1: i32) -> (i32, i32, i32) {
    %c0_i32 = arith.constant 0 : i32
    %c0_i32_0 = arith.constant 0 : i32
    return %arg0, %c0_i32, %arg1 : i32, i32, i32
  }
  func.func @transform_1(%arg0: i32, %arg1: i32) -> (i32, i32) {
    %c0_i32 = arith.constant 0 : i32
    %c0_i32_0 = arith.constant 0 : i32
    %c0_i32_1 = arith.constant 0 : i32
    return %c0_i32, %c0_i32_0 : i32, i32
  }
  func.func @transform_2(%arg0: i32, %arg1: i32) -> (i32, i32, i32) {
    %c0_i32 = arith.constant 0 : i32
    %c0_i32_0 = arith.constant 0 : i32
    return %arg0, %c0_i32, %arg1 : i32, i32, i32
  }
  func.func @transform_3(%arg0: i32, %arg1: i32) -> (i32, i32, i32, i32) {
    %c0_i32 = arith.constant 0 : i32
    %c0_i32_0 = arith.constant 0 : i32
    %c0_i32_1 = arith.constant 0 : i32
    return %arg0, %arg1, %c0_i32, %c0_i32_0 : i32, i32, i32, i32
  }
  func.func @transform_4(%arg0: i32, %arg1: i32) -> (i32, i32, i32, i32) {
    %c0_i32 = arith.constant 0 : i32
    %c0_i32_0 = arith.constant 0 : i32
    %c0_i32_1 = arith.constant 0 : i32
    return %arg0, %arg1, %c0_i32, %c0_i32_0 : i32, i32, i32, i32
  }
}

</mosaic_0001>

<bundles_post_ra>
// kernel: tpu_custom_call.1
= control target key start
LH: loop header
LB: loop body
LE: loop exit
PB: predicated region body
PF: predicated region fallthrough
CT: control target
= control target key end

     0   :  { %10 = vsyncpa [#allocation3], 0  ;;  %s1530_s0 = inlined_call_operand.hbm [shape: f32[2,16,256], index: 0, kind: input, shape index: {}]   ;;  %s1531_s1 = inlined_call_operand.hbm [shape: f32[4,16], index: 1, kind: input, shape index: {}]   ;;  %s1532_s2 = inlined_call_operand.hbm [shape: f32[2,4,256], index: 2, kind: output, shape index: {0}]   ;;  %s1533_s3 = inlined_call_operand.vmem [shape: f32[2,1,4,1], index: 3, kind: output, shape index: {1}]   ;;  %s1534_s4 = inlined_call_operand.vmem [shape: f32[2,1,4,1], index: 4, kind: output, shape index: {2}]  }
   0x1   :  { %12 = vsyncpa [#allocation3 + $0x1], 0 }
   0x2   :  { %13 = vsyncpa [#allocation6], 0 }
   0x3   :  { %14 = vsyncpa [#allocation4], 0 }
   0x4   :  { %16 = vsyncpa [#allocation4 + $0x1], 0  ;;  %s1308_s15 = smov 0   ;;  %s1310_s16 = smov 0  }
   0x5   :  { %s1312_s17 = smov 0   ;;  %s1314_s18 = smov 0  }
   0x6   :  { %s1316_s19 = smov 0   ;;  %s1318_s20 = smov 0  }
   0x7 LB: > { %s1000_s21 = sadd.s32 4294967295, %s1275_s20   ;;  %s1001_s22 = sadd.s32 4294967294, %s1275_s20   ;;  %s1275_s20 = sphi %s1318_s20, %s22_s20   ;;  %s1271_s19 = sphi %s1316_s19, %s1562_s19   ;;  %s1267_s18 = sphi %s1314_s18, %s1561_s18   ;;  %s1263_s17 = sphi %s1312_s17, %s1560_s17   ;;  %s1259_s16 = sphi %s1310_s16, %s1559_s16   ;;  %s1255_s15 = sphi %s1308_s15, %s1558_s15  }
   0x8   : > { %s43_s23 = sadd.s32 1, %s1263_s17  ;;  %p50_p0 = scmp.ne.s32.totalorder %s1263_s17, %s1259_s16 }
   0x9   : > { %p51_p1 = scmp.eq.s32.totalorder %s1275_s20, 0  ;;  %p56_p2 = scmp.ne.s32.totalorder %s1259_s16, %s1255_s15 }
   0xa   : > { %p1346_p3 = scmp.eq.s32.totalorder %s1000_s21, 0  ;;  %p103_p4 = scmp.eq.s32.totalorder %s1000_s21, 1 }
   0xb   : > { %p1350_p5 = por %p51_p1, %p50_p0  ;;  %p109_p6 = scmp.eq.s32.totalorder %s1001_s22, 1 }
   0xc   : > { %s1541_s24 = scalar_select %p1346_p3, 1, 0 }
   0xd   : > { %p1356_p7 = por %p1346_p3, %p56_p2  ;;  %p1360_p8 = por %p103_p4, %p50_p0 }
   0xe   : > { %p1364_p9 = por %p109_p6, %p56_p2  ;;  %p1002_p10 = scmp.ge.s32.totalorder %s1275_s20, 1 }
   0xf   : > { %s1543_s26 = scalar_select %p1356_p7, 1, 0 }
  0x10   : > { %s1544_s27 = scalar_select %p1360_p8, 1, 0 }
  0x11   : > { %s1545_s28 = scalar_select %p1364_p9, 1, 0 }
  0x12   : > { %p172_p11 = scmp.lt.s32.totalorder %s1275_s20, 3  ;;  %s1277_s30 = smov [#allocation5]  }
  0x13   : > { %s185_s5 = sshll.u32 %s1277_s30, 4  ;;  %p1076_p1 = scmp.lt.s32.totalorder %s1275_s20, 2  ;;  %s186_s5 = int_to_ptr.vmem [resolvable:$true] %s185_s5 }
  0x14   : > { %p1371_p13 = pnand %p1002_p10, %p172_p11  ;;  %s34_s8 = sadd.s32 1, %s1271_s19 }
  0x15   : > { %p1380_p4 = pnand %p1076_p1, %p1350_p5  ;;  %p1391_p6 = scmp.ge.s32.totalorder %s34_s8, 2 }
  0x16   : > { %s1546_s29 = scalar_select %p1371_p13, 1, 0 }
  0x17   : > { %p1063_p0 = pneg %p1371_p13  ;;  %s196_s10 = sand.u32 1, %s1263_s17  }
  0x18   : > { %s1547_s6 = scalar_select %p1380_p4, 1, 0 }
  0x19   : > { %p1386_p2 = pnand %p1063_p0, %p1346_p3  ;;  %s1131_s13 = scalar_lea.hbm %s1531_s1, 64 }
  0x1a   : > { %s1549_s9 = scalar_select %p1391_p6, 1, 0 }
  0x1b   : > { %p1132_p5 = scmp.ne.s32.totalorder %s1531_s1, %s1131_s13  ;;  %p1133_p10 = pneg %p1386_p2 }
  0x1c   : > { %p1138_p0 = scmp.lt.u32.totalorder %s1131_s13, %s1531_s1 }
  0x1d   : > { %p1134_p11 = pnand %p1133_p10, %p1132_p5 }
  0x1f   : > { %p1135_p1 = pneg %p1134_p11 }
  0x21   : > { %p1140_p12 = pnand %p1138_p0, %p1135_p1 }
  0x23   : > { %1143 = shalt.err (!%p1140_p12)
}
  0x24   : > { %s1144_s30 = scalar_lea.vmem %s186_s5, 64  ;;  %p1152_p7 = scmp.lt.s32.totalorder %s186_s5, %s186_s5 }
  0x25   : > { %p1145_p9 = scmp.ne.s32.totalorder %s186_s5, %s1144_s30  ;;  %p1153_p13 = scmp.lt.s32.totalorder %s1144_s30, %s1144_s30 }
  0x27   : > { %p1147_p8 = pnand %p1145_p9, %p1133_p10  ;;  %p1154_p4 = por %p1153_p13, %p1152_p7 }
  0x29   : > { %p1148_p3 = pneg %p1147_p8 }
  0x2b   : > { %p1155_p6 = pnand %p1154_p4, %p1148_p3 }
  0x2d   : > { %1158 = shalt.err (!%p1155_p6)
}
  0x2e   : > { %1066 = dma.hbm_to_vmem [thread:$0]  (!%p1386_p2), %s1531_s1, 64, %s186_s5, [#allocation6]  }
  0x2f   : > { %p1550_p9 = scmp.ne.s32.totalorder %s1549_s9, 0  ;;  %s1005_s13 = sshll.u32 %s196_s10, 5 }
  0x30   : > { %s1019_s21 = sshll.u32 %s1271_s19, 9  ;;  %s200_s30 = scalar_lea.vmem [#allocation2], %s1005_s13 }
  0x31   : > { %s1564_s8 = smov (%p1550_p9, %s34_s8), 0  ;;  %s1422_s25 = scalar_lea.hbm %s1530_s0, %s1019_s21 }
  0x32   : > { %s38_s14 = ssub.s32 %s1271_s19, %s1564_s8  ;;  %s209_s11 = sshll.u32 %s200_s30, 4  ;;  %s1429_s11 = int_to_ptr.vmem [resolvable:$true] %s209_s11 }
  0x33   : > { %p41_p3 = scmp.eq.s32.totalorder %s38_s14, 0  ;;  %s1431_s9 = scalar_lea.sflag [#allocation3], %s196_s10 }
  0x34   : > { %s1159_s12 = scalar_lea.hbm %s1422_s25, 512  ;;  %p1551_p8 = scmp.ne.s32.totalorder %s1547_s6, 0 }
  0x35   : > { %s1427_s5 = scalar_select %p41_p3, %s1263_s17, %s43_s23  }
  0x36   : > { %p1160_p7 = scmp.ne.s32.totalorder %s1422_s25, %s1159_s12  ;;  %p1161_p12 = pneg %p1551_p8 }
  0x37   : > { %s1164_s13 = scalar_lea.hbm %s1530_s0, 1024  ;;  %p1165_p2 = scmp.lt.u32.totalorder %s1422_s25, %s1530_s0 }
  0x38   : > { %p1162_p13 = pnand %p1161_p12, %p1160_p7  ;;  %p1166_p6 = scmp.lt.u32.totalorder %s1164_s13, %s1159_s12 }
  0x39   : > { %p1168_p10 = scmp.lt.u32.totalorder %s1159_s12, %s1422_s25 }
  0x3a   : > { %p1163_p4 = pneg %p1162_p13  ;;  %p1167_p5 = por %p1166_p6, %p1165_p2 }
  0x3c   : > { %p1169_p11 = por %p1168_p10, %p1167_p5 }
  0x3e   : > { %p1170_p1 = pnand %p1169_p11, %p1163_p4 }
  0x40   : > { %1173 = shalt.err (!%p1170_p1)
}
  0x41   : > { %s1174_s23 = scalar_lea.vmem %s1429_s11, 512  ;;  %s1278_s10 = smov [#allocation2]  }
  0x42   : > { %p1175_p0 = scmp.ne.s32.totalorder %s1429_s11, %s1174_s23  ;;  %s1179_s30 = sshll.u32 %s1278_s10, 4  ;;  %s1180_s30 = int_to_ptr.vmem [resolvable:$false] %s1179_s30 }
  0x43   : > { %s1181_s14 = scalar_lea.vmem %s1180_s30, 1024  ;;  %p1182_p7 = scmp.lt.s32.totalorder %s1429_s11, %s1180_s30 }
  0x44   : > { %p1177_p9 = pnand %p1175_p0, %p1161_p12  ;;  %p1183_p13 = scmp.lt.s32.totalorder %s1181_s14, %s1174_s23 }
  0x46   : > { %p1178_p3 = pneg %p1177_p9  ;;  %p1184_p2 = por %p1183_p13, %p1182_p7 }
  0x48   : > { %p1185_p6 = pnand %p1184_p2, %p1178_p3 }
  0x4a   : > { %1188 = shalt.err (!%p1185_p6)
}
  0x4b   : > { %s1279_s12 = smov 256   ;;  %s1280_s21 = smov 16  }
  0x4c   : > { %1070 = dma.hbm_to_vmem [thread:$0]  (!%p1551_p8), %s1422_s25, 512, %s1429_s11, %s1431_s9, %s1279_s12, %s1279_s12, %s1280_s21  }
  0x4d   : > { %p1552_p12 = scmp.ne.s32.totalorder %s1546_s29, 0 }
  0x4e   : > { %s1462_s13 = sand.u32 (!%p1552_p12), 1, %s1259_s16   ;;  %p1553_p4 = scmp.ne.s32.totalorder (!%p1552_p12), %s1543_s26, 0 }
  0x4f   : > { %221 = sbr.rel (%p1552_p12) target bundleno = 485 (0x1e5), region = 28  ;;  %s1009_s7 = sshll.u32 (!%p1552_p12), %s1462_s13, 5 }
  0x50   : > { %s224_s22 = scalar_lea.sflag (!%p1552_p12), [#allocation3], %s1462_s13  ;;  %s227_s23 = scalar_lea.vmem (!%p1552_p12), [#allocation2], %s1009_s7 }
  0x56   : > { %1242 = dma.done.wait (%p1553_p4), %s224_s22, 512  }
  0x57   : > { %1244 = vsyncadd (%p1553_p4), %s224_s22, 4294966784  ;;  %p1554_p5 = scmp.ne.s32.totalorder %s1541_s24, 0 }
  0x59   : > { %1246 = dma.done.wait (%p1554_p5), [#allocation6], 64  }
  0x5a   : > { %1248 = vsyncadd (%p1554_p5), [#allocation6], 4294967232  ;;  %v1281_v0 = vmov 0.0   ;;  %vm291_vm0 = vcmask 130048   ;;  %v287_v1 = vld [vmem:[%s227_s23 + $0x8] sm:$0xff]  ;;  %v289_v2 = vld [vmem:[%s227_s23 + $0x18] sm:$0xff] }
  0x5b   : > { %616 = vmatprep.mubr.f32.mxu0 %v1281_v0  ;;  %363 = vmatprep.mubr.f32.mxu1 %v1281_v0  ;;  %v286_v3 = vld [vmem:[%s227_s23] sm:$0xff]  ;;  %v295_v4 = vand.u32 4294901760, %v287_v1  ;;  %v299_v5 = vand.u32 4294901760, %v289_v2  ;;  %v288_v6 = vld [vmem:[%s227_s23 + $0x10] sm:$0xff]  ;;  %vm791_vm1 = vcmask 1043456   ;;  %s1011_s24 = sshll.u32 %s1462_s13, 3 }
  0x5c   : > { %v297_v7 = vand.u32 4294901760, %v286_v3  ;;  %v290_v8 = vld [vmem:[#allocation5] sm:$0xf]  ;;  %v301_v9 = vand.u32 4294901760, %v288_v6  ;;  %s251_s26 = scalar_lea.vmem [#allocation7], %s1011_s24  ;;  %s1020_s29 = sshll.u32 %s1267_s18, 7 }
  0x5d   : > { %v293_v10 = vsel %vm291_vm0, %v290_v8, 0  ;;  %v1021_v11 = vpack.c.bf16 %v299_v5, %v295_v4  ;;  %v376_v12 = vsub.f32 %v287_v1, %v295_v4  ;;  %v388_v13 = vsub.f32 %v289_v2, %v299_v5  ;;  %s838_s6 = sshll.u32 %s251_s26, 4  ;;  %s1479_s9 = scalar_lea.hbm %s1532_s2, %s1020_s29  ;;  %s839_s6 = int_to_ptr.vmem [resolvable:$true] %s838_s6 }
  0x5e   : > { %v382_v14 = vsub.f32 %v286_v3, %v297_v7  ;;  %v1023_v15 = vpack.c.bf16 %v301_v9, %v297_v7  ;;  %v394_v16 = vsub.f32 %v288_v6, %v301_v9  ;;  %v364_v17 = vand.u32 4294901760, %v293_v10  ;;  %s808_s10 = scalar_lea.sflag [#allocation4], %s1462_s13  ;;  %s1189_s30 = scalar_lea.vmem %s839_s6, 128 }
  0x5f   : > { %1034 = vmatprep.subr.bf16.mxu0 %v1021_v11  ;;  %1022 = vmatprep.subr.bf16.mxu1 %v1021_v11  ;;  %v377_v18 = vand.u32 4294901760, %v376_v12  ;;  %v389_v19 = vand.u32 4294901760, %v388_v13  ;;  %v1029_v38 = vpack.c.bf16 %v388_v13, %v376_v12  ;;  %p1190_p8 = scmp.ne.s32.totalorder %s839_s6, %s1189_s30  ;;  %p1555_p10 = scmp.ne.s32.totalorder %s1544_s27, 0 }
  0x60   : > { %v383_v20 = vand.u32 4294901760, %v382_v14  ;;  %1036 = vmatpush1.bf16.msra.mxu0 %v1023_v15  ;;  %1024 = vmatpush1.bf16.msra.mxu1 %v1023_v15  ;;  %v365_v21 = vsub.f32 %v293_v10, %v364_v17  ;;  %v395_v22 = vand.u32 4294901760, %v394_v16  ;;  %v1031_v39 = vpack.c.bf16 %v394_v16, %v382_v14  ;;  %s1282_s14 = smov [#allocation7]  }
  0x61   : > { %v378_v23 = vsub.f32 %v376_v12, %v377_v18  ;;  %v390_v24 = vsub.f32 %v388_v13, %v389_v19  ;;  %v1037_v25 = vpack.c.bf16 %v389_v19, %v377_v18  ;;  %p1191_p11 = pnand %p1190_p8, %p1555_p10  ;;  %s1193_s12 = sshll.u32 %s1282_s14, 4  ;;  %s1194_s12 = int_to_ptr.vmem [resolvable:$false] %s1193_s12 }
  0x62   : > { %v384_v26 = vsub.f32 %v382_v14, %v383_v20  ;;  %v366_v27 = vand.u32 4294901760, %v365_v21  ;;  %v396_v28 = vsub.f32 %v394_v16, %v395_v22  ;;  %v1039_v29 = vpack.c.bf16 %v395_v22, %v383_v20  ;;  %s1195_s21 = scalar_lea.vmem %s1194_s12, 256  ;;  %p1196_p0 = scmp.lt.s32.totalorder %s839_s6, %s1194_s12 }
  0x63   : > { %v379_v30 = vand.u32 4294901760, %v378_v23  ;;  %v391_v31 = vand.u32 4294901760, %v390_v24  ;;  %1038 = vmatprep.subr.bf16.mxu0 %v1037_v25  ;;  %p1192_p1 = pneg %p1191_p11  ;;  %p1197_p9 = scmp.lt.s32.totalorder %s1195_s21, %s1189_s30 }
  0x64   : > { %v385_v32 = vand.u32 4294901760, %v384_v26  ;;  %620 = vmatmul.mubr.f32.vlgmr.msra.gmra.mrb[0].mxu0 %v366_v27  ;;  %v367_v33 = vsub.f32 %v365_v21, %v366_v27  ;;  %v397_v34 = vand.u32 4294901760, %v396_v28 }
  0x65   : > { %v1025_v35 = vpack.c.bf16 %v391_v31, %v379_v30  ;;  %1040 = vmatpush1.bf16.msra.mxu0 %v1039_v29  ;;  %702 = vmatprep.mubr.f32.mxu0 %v1281_v0  ;;  %p1198_p3 = por %p1197_p9, %p1196_p0 }
  0x66   : > { %v368_v36 = vand.u32 4294901760, %v367_v33  ;;  %v1027_v37 = vpack.c.bf16 %v397_v34, %v385_v32  ;;  %1042 = vmatprep.subr.bf16.mxu0 %v1021_v11 }
  0x67   : > { %1026 = vmatprep.subr.bf16.mxu1 %v1025_v35  ;;  %p1199_p7 = pnand %p1198_p3, %p1192_p1 }
  0x68   : > { %369 = vmatmul.mubr.f32.vlgmr.msra.gmra.mrb[0].mxu1 %v368_v36 }
  0x69   : > { %1028 = vmatpush1.bf16.msra.mxu1 %v1027_v37  ;;  %459 = vmatprep.mubr.f32.mxu1 %v1281_v0 }
  0x6a   : > { %1030 = vmatprep.subr.bf16.mxu1 %v1029_v38 }
  0x6c   : > { %704 = vmatmul.mubr.f32.vlgmr.msra.gmra.mrb[0].mxu0 %v364_v17 }
  0x6d   : > { %1044 = vmatpush1.bf16.msra.mxu0 %v1023_v15  ;;  %778 = vmatprep.mubr.f32.mxu0 %v1281_v0 }
  0x70   : > { %461 = vmatmul.mubr.f32.vlgmr.msra.gmra.mrb[0].mxu1 %v364_v17 }
  0x71   : > { %1032 = vmatpush1.bf16.msra.mxu1 %v1031_v39  ;;  %539 = vmatprep.mubr.f32.mxu1 %v1281_v0 }
  0x74   : > { %780 = vmatmul.mubr.f32.vlgmr.msra.gmra.mrb[0].mxu0 %v364_v17 }
  0x78   : > { %542 = vmatmul.mubr.f32.vlgmr.msra.gmra.mrb[0].mxu1 %v365_v21 }
 0x147   : > { %v781_v40 = vpop.f32.mrb[0].mxu0 }
 0x148   : > { %v783_v41 = vpop.f32.mrb[1].mxu0 }
 0x14b   : > { %v543_v42 = vpop.f32.mrb[0].mxu1 }
 0x14c   : > { %v1045_v43 = vadd.f32 %v781_v40, %v543_v42  ;;  %v545_v44 = vpop.f32.mrb[1].mxu1 }
 0x14d   : > { %v1046_v45 = vadd.f32 %v783_v41, %v545_v44 }
 0x14e   : > { %v792_v46 = vsel %vm791_vm1, %v1045_v43, 0.0  ;;  %v799_v47 = vmul.f32 %v1045_v43, %v1045_v43 }
 0x14f   : > { %v788_v48 = vcombine.low %v1045_v43, %v1046_v45  ;;  %v793_v49 = vsel %vm791_vm1, %v1046_v45, 0.0  ;;  %v800_v50 = vmul.f32 %v1046_v45, %v1046_v45 }
 0x150   : > { %v794_v51 = vadd.f32 %v793_v49, %v792_v46  ;;  %v801_v52 = vsel %vm791_vm1, %v799_v47, 0.0 }
 0x151   : > { %v802_v53 = vsel %vm791_vm1, %v800_v50, 0.0  ;;  %790 = vst [vmem:[%s251_s26] sm:$0xff] %v788_v48 }
 0x152   : > { %795 = vadd.xlane.f32.xlu0 %v794_v51  ;;  %v803_v54 = vadd.f32 %v802_v53, %v801_v52 }
 0x156   : > { %804 = vadd.xlane.f32.xlu0 %v803_v54 }
 0x157   : > { %1202 = shalt.err (!%p1199_p7)
}
 0x158   : > { %s1203_s13 = scalar_lea.hbm %s1479_s9, 128  ;;  %s1207_s23 = scalar_lea.hbm %s1532_s2, 256 }
 0x159   : > { %p1204_p13 = scmp.ne.s32.totalorder %s1479_s9, %s1203_s13  ;;  %p1208_p12 = scmp.lt.u32.totalorder %s1479_s9, %s1532_s2 }
 0x15a   : > { %p1209_p4 = scmp.lt.u32.totalorder %s1207_s23, %s1203_s13  ;;  %p1211_p8 = scmp.lt.u32.totalorder %s1203_s13, %s1479_s9 }
 0x15b   : > { %p1205_p2 = pnand %p1204_p13, %p1555_p10 }
 0x15c   : > { %p1210_p5 = por %p1209_p4, %p1208_p12 }
 0x15d   : > { %p1206_p6 = pneg %p1205_p2 }
 0x15e   : > { %p1212_p11 = por %p1211_p8, %p1210_p5 }
 0x160   : > { %p1213_p1 = pnand %p1212_p11, %p1206_p6 }
 0x162   : > { %1216 = shalt.err (!%p1213_p1)
}
 0x163   : > { %1061 = dma.vmem_to_hbm [thread:$0]  (%p1555_p10), %s839_s6, 128, %s1479_s9, %s808_s10   ;;  %vm797_vm2 = vcmask 3072  }
 0x164   : > { %p272_p0 = scmp.lt.s32.totalorder %s1267_s18, 1 }
 0x166   : > { %s1566_s18 = smov (!%p272_p0, %s1267_s18), 1 }
 0x167   : > { %s1012_s29 = sshll.u32 %s1566_s18, 2 }
 0x168   : > { %s278_s30 = scalar_lea.vmem %s1533_s3, %s1012_s29  ;;  %s285_s21 = scalar_lea.vmem %s1534_s4, %s1012_s29 }
 0x1df   : > { %v796_v55 = vpop.xlane.xlu0 %795 }
 0x1e0   : > { %798 = vst.msk [vmem:[%s278_s30] sm:$0xf] %vm797_vm2, %v796_v55 }
 0x1e3   : > { %v805_v56 = vpop.xlane.xlu0 %804 }
 0x1e4   : > { %806 = vst.msk [vmem:[%s285_s21] sm:$0xf] %vm797_vm2, %v805_v56 }
 0x1e5 PF: > { %s856_s27 = sand.u32 1, %s1255_s15   ;;  %p1556_p10 = scmp.ne.s32.totalorder %s1545_s28, 0 }
 0x1e6   : > { %p1557_p9 = scmp.ge.s32.totalorder %s1275_s20, 2  ;;  %s857_s18 = scalar_lea.sflag [#allocation4], %s856_s27 }
 0x1e8   : > { %p1072_p3 = pnand %p1557_p9, %p1556_p10 }
 0x1ea   : > { %1250 = dma.done.wait (!%p1072_p3), %s857_s18, 128  }
 0x1eb   : > { %1252 = vsyncadd (!%p1072_p3), %s857_s18, 4294967168  ;;  %s22_s20 = sadd.s32 1, %s1275_s20   ;;  %s1558_s15 = smov %s1259_s16 }
 0x1ec   : > { %p19_p7 = scmp.ge.s32.totalorder %s22_s20, 4   ;;  %s1559_s16 = smov %s1263_s17 }
 0x1ed   : > { %s1560_s17 = smov %s1427_s5  ;;  %s1561_s18 = smov %s1271_s19 }
 0x1ee   : > { %s1562_s19 = smov %s1564_s8  ;;  %21 = sbr.rel (!%p19_p7) target bundleno = 7 (0x7), region = 101 }
 0x1f5   :  { %882 = vsyncpa [#allocation3], 1 }
 0x1f6   :  { %884 = vsyncpa [#allocation3 + $0x1], 1 }
 0x1f7   :  { %885 = vsyncpa [#allocation6], 1 }
 0x1f8   :  { %886 = vsyncpa [#allocation4], 1 }
 0x1f9   :  { %888 = vsyncpa [#allocation4 + $0x1], 1 }

</bundles_post_ra>
